<compile_context>
chip_gen: v6e
topology: v6e:2x2x1
jax: 0.10.0
libtpu: 0.0.40
codegen_flags: <defaults>
</compile_context>

<pallas_src>
import functools
from typing import NamedTuple, Tuple

import jax
import jax.numpy as jnp
from jax.experimental import pallas as pl
from jax.experimental.pallas import tpu as pltpu

_LANE = 128      # TPU lane width (last-dim tiling unit)
_SUBLANE = 8     # f32 sublane width (second-to-last-dim tiling unit)


def _round_up(x, m):
    return ((x + m - 1) // m) * m


def _is_v7x():
    try:
        kind = jax.devices()[0].device_kind.lower()
    except Exception:
        return False
    return "v7" in kind or "7x" in kind


class PreparedMLP(NamedTuple):
    weights: Tuple[jax.Array, ...]   # per layer (d_in_padded, d_out_padded), compute dtype
    biases: Tuple[jax.Array, ...]    # per layer (1, d_out_padded), float32
    in_features: int
    out_features: int


def prepare_mlp_params(weights, biases, compute_dtype=jnp.bfloat16):
    """One-time parameter preparation: pad to lane-dense layout, cast to MXU dtype.

    weights: list of (in_features, out_features) arrays (transposed relative to
             PyTorch nn.Linear.weight);  biases: list of (out_features,) or
             (1, out_features) arrays.

    The input feature dim of layer 0 is left unpadded (matches unpadded x);
    every hidden/output boundary is padded to a multiple of 128.  Zero padding
    is exact: padded weight rows/cols and padded bias entries are 0 and
    relu(0)=tanh(0)=0, so valid outputs are unchanged.
    """
    in_features = weights[0].shape[0]
    out_features = weights[-1].shape[1]
    sizes = [in_features] + [w.shape[1] for w in weights]
    padded = [in_features] + [_round_up(s, _LANE) for s in sizes[1:]]

    w_p, b_p = [], []
    for l, (w, b) in enumerate(zip(weights, biases)):
        wp = (jnp.zeros((padded[l], padded[l + 1]), jnp.float32)
              .at[: w.shape[0], : w.shape[1]].set(w.astype(jnp.float32)))
        w_p.append(wp.astype(compute_dtype))            # stored in HBM in compute dtype
        b2 = jnp.asarray(b, jnp.float32).reshape(1, -1)
        bp = (jnp.zeros((1, padded[l + 1]), jnp.float32)
              .at[:, : b2.shape[1]].set(b2))
        b_p.append(bp)                                   # bias stays f32
    return PreparedMLP(tuple(w_p), tuple(b_p), in_features, out_features)


def _mlp_kernel(*refs, n_layers, activation):
    # refs = (x_ref, w0_ref, b0_ref, ..., w{L-1}_ref, b{L-1}_ref, o_ref)
    x_ref = refs[0]
    o_ref = refs[-1]
    param_refs = refs[1:-1]

    h = x_ref[...]                                # (TILE_B, D0) float32
    for l in range(n_layers):
        w = param_refs[2 * l][...]                # (Din_p, Dout_p), compute dtype
        b = param_refs[2 * l + 1][...]            # (1, Dout_p), f32
        lhs = h.astype(w.dtype)                   # no-op when compute dtype is f32
        h = jnp.dot(lhs, w, preferred_element_type=jnp.float32) + b
        if l < n_layers - 1:                      # activation on all but the last layer
            h = jnp.tanh(h) if activation == "tanh" else jnp.maximum(h, 0.0)
    o_ref[...] = h.astype(o_ref.dtype)


def mlp_forward(x, params: PreparedMLP, activation="relu", tile_b=None):
    """Fused MLP forward pass as a single pipelined Pallas TPU kernel.

    x:       (batch, in_features) array
    params:  output of prepare_mlp_params (padded / pre-cast, reused across calls)
    """
    n_layers = len(params.weights)
    batch, in_features = x.shape
    assert in_features == params.in_features, "x feature dim mismatch"
    is_v7 = _is_v7x()

    # ---- batch tile selection ------------------------------------------------
    if tile_b is None:
        tile_b = 512                               # amortizes ~0.35 us per-step overhead
    tile_b = min(tile_b, _round_up(batch, _SUBLANE))
    if is_v7 and batch >= 4 * _SUBLANE:
        # >= 4 grid steps so each of the two v7x TensorCores gets >= 2 pipelined steps.
        tile_b = min(tile_b, _round_up(pl.cdiv(batch, 4), _SUBLANE))
    tile_b = max(_SUBLANE, _round_up(tile_b, _SUBLANE))

    batch_p = _round_up(batch, tile_b)
    x_in = x if batch_p == batch else jnp.pad(x, ((0, batch_p - batch), (0, 0)))

    d_out_p = params.weights[-1].shape[1]
    grid = (batch_p // tile_b,)

    flat_params = []
    for w, b in zip(params.weights, params.biases):
        flat_params += [w, b]

    # VMEM budget per generation: v7x has 64 MiB physical per TC, v5e/v6e 128 MiB.
    vmem_limit = (48 if is_v7 else 96) * 1024 * 1024

    kernel = functools.partial(_mlp_kernel, n_layers=n_layers, activation=activation)

    def _call(single_buffer_params):
        # x tile streams over the batch grid; weights/biases are resident
        # (constant block index => loaded once, kept in VMEM).
        in_specs = [pl.BlockSpec((tile_b, in_features), lambda i: (i, 0))]
        for w, b in zip(params.weights, params.biases):
            if single_buffer_params:
                in_specs.append(pl.BlockSpec(w.shape, lambda i: (0, 0),
                                             pipeline_mode=pl.Buffered(1)))
                in_specs.append(pl.BlockSpec(b.shape, lambda i: (0, 0),
                                             pipeline_mode=pl.Buffered(1)))
            else:
                in_specs.append(pl.BlockSpec(w.shape, lambda i: (0, 0)))
                in_specs.append(pl.BlockSpec(b.shape, lambda i: (0, 0)))
        out_spec = pl.BlockSpec((tile_b, d_out_p), lambda i: (i, 0))
        return pl.pallas_call(
            kernel,
            out_shape=jax.ShapeDtypeStruct((batch_p, d_out_p), x.dtype),
            grid=grid,
            in_specs=in_specs,
            out_specs=out_spec,
            compiler_params=pltpu.CompilerParams(
                dimension_semantics=("parallel",),   # batch shards across v7x TCs
                vmem_limit_bytes=vmem_limit,
            ),
        )(x_in, *flat_params)

    try:
        # Preferred: single-buffered resident parameters (halves their VMEM use).
        out_p = _call(single_buffer_params=True)
    except Exception:
        # Portability fallback if this JAX version rejects pipeline_mode=Buffered(1).
        out_p = _call(single_buffer_params=False)

    # Slice the valid region out of the lane-dense padded output (cheap).
    return out_p[:batch, :params.out_features]


def init_mlp_params(key, input_size, output_size, nlayers, hidden_size,
                    initialisation=None):
    """Synthetic init mirroring the module's layer shapes.

    nn.Linear(in, out) -> weight (out, in), bias (out,).  Stored transposed as
    (in, out) for the kernel; biases as (1, out).
    """
    sizes = [input_size] + [hidden_size] * (nlayers - 1) + [output_size]
    weights, biases = [], []
    keys = jax.random.split(key, nlayers)
    for l in range(nlayers):
        fan_in, fan_out = sizes[l], sizes[l + 1]
        is_last = l == nlayers - 1
        if is_last and initialisation == "zeros":
            w = jnp.zeros((fan_in, fan_out), jnp.float32)
        else:
            w = 0.05 * jax.random.normal(keys[l], (fan_in, fan_out), jnp.float32)
        b = jnp.zeros((1, fan_out), jnp.float32)
        weights.append(w)
        biases.append(b)
    return weights, biases


def mlp_reference(x, weights, biases, activation="relu"):
    h = x
    for l, (w, b) in enumerate(zip(weights, biases)):
        h = h @ w + b.reshape(1, -1)
        if l < len(weights) - 1:
            h = jnp.tanh(h) if activation == "tanh" else jnp.maximum(h, 0.0)
    return h


if __name__ == "__main__":
    key = jax.random.PRNGKey(0)
    k_x, k_p, k_x2 = jax.random.split(key, 3)

    # Shapes consistent with the module: MLP(input_size=4, output_size=2,
    # nlayers=3, hidden_size=32).
    batch, input_size, hidden_size, output_size, nlayers = 8, 4, 32, 2, 3

    x = jax.random.normal(k_x, (batch, input_size), jnp.float32)
    weights, biases = init_mlp_params(k_p, input_size, output_size, nlayers,
                                      hidden_size, initialisation=None)

    # One-time parameter preparation (reused across all forward calls).
    params_bf16 = prepare_mlp_params(weights, biases, compute_dtype=jnp.bfloat16)
    params_f32 = prepare_mlp_params(weights, biases, compute_dtype=jnp.float32)

    # --- exact f32 path, relu ---
    out_f32 = jax.block_until_ready(mlp_forward(x, params_f32, activation="relu"))
    ref = mlp_reference(x, weights, biases, activation="relu")
    assert out_f32.shape == (batch, output_size)
    assert jnp.allclose(out_f32, ref, atol=1e-5, rtol=1e-5)

    # --- default bf16 MXU path, relu ---
    out_bf16 = jax.block_until_ready(mlp_forward(x, params_bf16, activation="relu"))
    assert jnp.allclose(out_bf16, ref, atol=1e-2, rtol=1e-2)

    # --- tanh activation path (bf16 operands, f32 activation) ---
    out_t = jax.block_until_ready(mlp_forward(x, params_bf16, activation="tanh"))
    ref_t = mlp_reference(x, weights, biases, activation="tanh")
    assert jnp.allclose(out_t, ref_t, atol=1e-2, rtol=1e-2)

    # --- multi-step batch grid (4 grid steps, divisible batch) ---
    big_batch = 64
    x_big = jax.random.normal(k_x2, (big_batch, input_size), jnp.float32)
    out_big = jax.block_until_ready(
        mlp_forward(x_big, params_bf16, activation="relu", tile_b=16))
    ref_big = mlp_reference(x_big, weights, biases, activation="relu")
    assert out_big.shape == (big_batch, output_size)
    assert jnp.allclose(out_big, ref_big, atol=1e-2, rtol=1e-2)

    # --- non-divisible batch (exercises the batch-padding path) ---
    odd_batch = 20
    x_odd = x_big[:odd_batch]
    out_odd = jax.block_until_ready(
        mlp_forward(x_odd, params_f32, activation="relu", tile_b=8))
    ref_odd = mlp_reference(x_odd, weights, biases, activation="relu")
    assert out_odd.shape == (odd_batch, output_size)
    assert jnp.allclose(out_odd, ref_odd, atol=1e-5, rtol=1e-5)

    print("KERNEL_OK")
</pallas_src>

<mosaic_0001>
module attributes {stable_mosaic.version = 11 : i64} {
  func.func @_mlp_kernel(%arg0: i32, %arg1: memref<8x4xf32, #tpu.memory_space<vmem>>, %arg2: memref<4x128xf32, #tpu.memory_space<vmem>>, %arg3: memref<1x128xf32, #tpu.memory_space<vmem>>, %arg4: memref<128x128xf32, #tpu.memory_space<vmem>>, %arg5: memref<1x128xf32, #tpu.memory_space<vmem>>, %arg6: memref<128x128xf32, #tpu.memory_space<vmem>>, %arg7: memref<1x128xf32, #tpu.memory_space<vmem>>, %arg8: memref<8x128xf32, #tpu.memory_space<vmem>>) attributes {dimension_semantics = [#tpu.dimension_semantics<parallel>], iteration_bounds = array<i64: 1>, scalar_prefetch = 0 : i64, scratch_operands = 0 : i64, tpu.core_type = #tpu.core_type<tc>, window_params = [{transform_indices = @transform_0, window_bounds = array<i64: 8, 4>}, {pipeline_mode = #tpu.pipeline_mode<synchronous>, transform_indices = @transform_1, window_bounds = array<i64: 4, 128>}, {pipeline_mode = #tpu.pipeline_mode<synchronous>, transform_indices = @transform_2, window_bounds = array<i64: 1, 128>}, {pipeline_mode = #tpu.pipeline_mode<synchronous>, transform_indices = @transform_3, window_bounds = array<i64: 128, 128>}, {pipeline_mode = #tpu.pipeline_mode<synchronous>, transform_indices = @transform_4, window_bounds = array<i64: 1, 128>}, {pipeline_mode = #tpu.pipeline_mode<synchronous>, transform_indices = @transform_5, window_bounds = array<i64: 128, 128>}, {pipeline_mode = #tpu.pipeline_mode<synchronous>, transform_indices = @transform_6, window_bounds = array<i64: 1, 128>}, {transform_indices = @transform_7, window_bounds = array<i64: 8, 128>}]} {
    %c0 = arith.constant 0 : index
    %c0_0 = arith.constant 0 : index
    %0 = vector.load %arg1[%c0, %c0_0] : memref<8x4xf32, #tpu.memory_space<vmem>>, vector<8x4xf32>
    %c0_1 = arith.constant 0 : index
    %c0_2 = arith.constant 0 : index
    %1 = vector.load %arg2[%c0_1, %c0_2] : memref<4x128xf32, #tpu.memory_space<vmem>>, vector<4x128xf32>
    %c0_3 = arith.constant 0 : index
    %c0_4 = arith.constant 0 : index
    %2 = vector.load %arg3[%c0_3, %c0_4] : memref<1x128xf32, #tpu.memory_space<vmem>>, vector<1x128xf32>
    %cst = arith.constant dense<0.000000e+00> : vector<8x128xf32>
    %3 = tpu.matmul %0, %1, %cst {dimension_numbers = #tpu.dot_dimension_numbers<[1], [0], [0], [1], [0, 0, 1, 1], [], []>} : vector<8x4xf32>, vector<4x128xf32>, vector<8x128xf32> -> vector<8x128xf32>
    %4 = vector.broadcast %2 : vector<1x128xf32> to vector<8x128xf32>
    %5 = arith.addf %3, %4 : vector<8x128xf32>
    %cst_5 = arith.constant 0.000000e+00 : f32
    %6 = vector.broadcast %cst_5 : f32 to vector<8x128xf32>
    %7 = arith.maximumf %5, %6 : vector<8x128xf32>
    %c0_6 = arith.constant 0 : index
    %c0_7 = arith.constant 0 : index
    %8 = vector.load %arg4[%c0_6, %c0_7] : memref<128x128xf32, #tpu.memory_space<vmem>>, vector<128x128xf32>
    %c0_8 = arith.constant 0 : index
    %c0_9 = arith.constant 0 : index
    %9 = vector.load %arg5[%c0_8, %c0_9] : memref<1x128xf32, #tpu.memory_space<vmem>>, vector<1x128xf32>
    %cst_10 = arith.constant dense<0.000000e+00> : vector<8x128xf32>
    %10 = tpu.matmul %7, %8, %cst_10 {dimension_numbers = #tpu.dot_dimension_numbers<[1], [0], [0], [1], [0, 0, 1, 1], [], []>} : vector<8x128xf32>, vector<128x128xf32>, vector<8x128xf32> -> vector<8x128xf32>
    %11 = vector.broadcast %9 : vector<1x128xf32> to vector<8x128xf32>
    %12 = arith.addf %10, %11 : vector<8x128xf32>
    %cst_11 = arith.constant 0.000000e+00 : f32
    %13 = vector.broadcast %cst_11 : f32 to vector<8x128xf32>
    %14 = arith.maximumf %12, %13 : vector<8x128xf32>
    %c0_12 = arith.constant 0 : index
    %c0_13 = arith.constant 0 : index
    %15 = vector.load %arg6[%c0_12, %c0_13] : memref<128x128xf32, #tpu.memory_space<vmem>>, vector<128x128xf32>
    %c0_14 = arith.constant 0 : index
    %c0_15 = arith.constant 0 : index
    %16 = vector.load %arg7[%c0_14, %c0_15] : memref<1x128xf32, #tpu.memory_space<vmem>>, vector<1x128xf32>
    %cst_16 = arith.constant dense<0.000000e+00> : vector<8x128xf32>
    %17 = tpu.matmul %14, %15, %cst_16 {dimension_numbers = #tpu.dot_dimension_numbers<[1], [0], [0], [1], [0, 0, 1, 1], [], []>} : vector<8x128xf32>, vector<128x128xf32>, vector<8x128xf32> -> vector<8x128xf32>
    %18 = vector.broadcast %16 : vector<1x128xf32> to vector<8x128xf32>
    %19 = arith.addf %17, %18 : vector<8x128xf32>
    %c0_17 = arith.constant 0 : index
    %c0_18 = arith.constant 0 : index
    %20 = vector.load %arg8[%c0_17, %c0_18] : memref<8x128xf32, #tpu.memory_space<vmem>>, vector<8x128xf32>
    tpu.vector_store %arg8[%c0_17, %c0_18], %19 {strides = array<i32>} : memref<8x128xf32, #tpu.memory_space<vmem>>, vector<8x128xf32>,
    return
  }
  func.func @transform_0(%arg0: i32) -> (i32, i32) {
    %c0_i32 = arith.constant 0 : i32
    %c0_i32_0 = arith.constant 0 : i32
    return %arg0, %c0_i32 : i32, i32
  }
  func.func @transform_1(%arg0: i32) -> (i32, i32) {
    %c0_i32 = arith.constant 0 : i32
    %c0_i32_0 = arith.constant 0 : i32
    %c0_i32_1 = arith.constant 0 : i32
    return %c0_i32, %c0_i32_0 : i32, i32
  }
  func.func @transform_2(%arg0: i32) -> (i32, i32) {
    %c0_i32 = arith.constant 0 : i32
    %c0_i32_0 = arith.constant 0 : i32
    %c0_i32_1 = arith.constant 0 : i32
    return %c0_i32, %c0_i32_0 : i32, i32
  }
  func.func @transform_3(%arg0: i32) -> (i32, i32) {
    %c0_i32 = arith.constant 0 : i32
    %c0_i32_0 = arith.constant 0 : i32
    %c0_i32_1 = arith.constant 0 : i32
    return %c0_i32, %c0_i32_0 : i32, i32
  }
  func.func @transform_4(%arg0: i32) -> (i32, i32) {
    %c0_i32 = arith.constant 0 : i32
    %c0_i32_0 = arith.constant 0 : i32
    %c0_i32_1 = arith.constant 0 : i32
    return %c0_i32, %c0_i32_0 : i32, i32
  }
  func.func @transform_5(%arg0: i32) -> (i32, i32) {
    %c0_i32 = arith.constant 0 : i32
    %c0_i32_0 = arith.constant 0 : i32
    %c0_i32_1 = arith.constant 0 : i32
    return %c0_i32, %c0_i32_0 : i32, i32
  }
  func.func @transform_6(%arg0: i32) -> (i32, i32) {
    %c0_i32 = arith.constant 0 : i32
    %c0_i32_0 = arith.constant 0 : i32
    %c0_i32_1 = arith.constant 0 : i32
    return %c0_i32, %c0_i32_0 : i32, i32
  }
  func.func @transform_7(%arg0: i32) -> (i32, i32) {
    %c0_i32 = arith.constant 0 : i32
    %c0_i32_0 = arith.constant 0 : i32
    return %arg0, %c0_i32 : i32, i32
  }
}

module attributes {stable_mosaic.version = 11 : i64} {
  func.func @_mlp_kernel(%arg0: i32, %arg1: memref<8x4xf32, #tpu.memory_space<vmem>>, %arg2: memref<4x128xf32, #tpu.memory_space<vmem>>, %arg3: memref<1x128xf32, #tpu.memory_space<vmem>>, %arg4: memref<128x128xf32, #tpu.memory_space<vmem>>, %arg5: memref<1x128xf32, #tpu.memory_space<vmem>>, %arg6: memref<128x128xf32, #tpu.memory_space<vmem>>, %arg7: memref<1x128xf32, #tpu.memory_space<vmem>>, %arg8: memref<8x128xf32, #tpu.memory_space<vmem>>) attributes {dimension_semantics = [#tpu.dimension_semantics<parallel>], iteration_bounds = array<i64: 1>, scalar_prefetch = 0 : i64, scratch_operands = 0 : i64, tpu.core_type = #tpu.core_type<tc>, window_params = [{transform_indices = @transform_0, window_bounds = array<i64: 8, 4>}, {pipeline_mode = #tpu.pipeline_mode<synchronous>, transform_indices = @transform_1, window_bounds = array<i64: 4, 128>}, {pipeline_mode = #tpu.pipeline_mode<synchronous>, transform_indices = @transform_2, window_bounds = array<i64: 1, 128>}, {pipeline_mode = #tpu.pipeline_mode<synchronous>, transform_indices = @transform_3, window_bounds = array<i64: 128, 128>}, {pipeline_mode = #tpu.pipeline_mode<synchronous>, transform_indices = @transform_4, window_bounds = array<i64: 1, 128>}, {pipeline_mode = #tpu.pipeline_mode<synchronous>, transform_indices = @transform_5, window_bounds = array<i64: 128, 128>}, {pipeline_mode = #tpu.pipeline_mode<synchronous>, transform_indices = @transform_6, window_bounds = array<i64: 1, 128>}, {transform_indices = @transform_7, window_bounds = array<i64: 8, 128>}]} {
    %c0 = arith.constant 0 : index
    %c0_0 = arith.constant 0 : index
    %0 = vector.load %arg1[%c0, %c0_0] : memref<8x4xf32, #tpu.memory_space<vmem>>, vector<8x4xf32>
    %c0_1 = arith.constant 0 : index
    %c0_2 = arith.constant 0 : index
    %1 = vector.load %arg2[%c0_1, %c0_2] : memref<4x128xf32, #tpu.memory_space<vmem>>, vector<4x128xf32>
    %c0_3 = arith.constant 0 : index
    %c0_4 = arith.constant 0 : index
    %2 = vector.load %arg3[%c0_3, %c0_4] : memref<1x128xf32, #tpu.memory_space<vmem>>, vector<1x128xf32>
    %cst = arith.constant dense<0.000000e+00> : vector<8x128xf32>
    %3 = tpu.matmul %0, %1, %cst {dimension_numbers = #tpu.dot_dimension_numbers<[1], [0], [0], [1], [0, 0, 1, 1], [], []>} : vector<8x4xf32>, vector<4x128xf32>, vector<8x128xf32> -> vector<8x128xf32>
    %4 = vector.broadcast %2 : vector<1x128xf32> to vector<8x128xf32>
    %5 = arith.addf %3, %4 : vector<8x128xf32>
    %cst_5 = arith.constant 0.000000e+00 : f32
    %6 = vector.broadcast %cst_5 : f32 to vector<8x128xf32>
    %7 = arith.maximumf %5, %6 : vector<8x128xf32>
    %c0_6 = arith.constant 0 : index
    %c0_7 = arith.constant 0 : index
    %8 = vector.load %arg4[%c0_6, %c0_7] : memref<128x128xf32, #tpu.memory_space<vmem>>, vector<128x128xf32>
    %c0_8 = arith.constant 0 : index
    %c0_9 = arith.constant 0 : index
    %9 = vector.load %arg5[%c0_8, %c0_9] : memref<1x128xf32, #tpu.memory_space<vmem>>, vector<1x128xf32>
    %cst_10 = arith.constant dense<0.000000e+00> : vector<8x128xf32>
    %10 = tpu.matmul %7, %8, %cst_10 {dimension_numbers = #tpu.dot_dimension_numbers<[1], [0], [0], [1], [0, 0, 1, 1], [], []>} : vector<8x128xf32>, vector<128x128xf32>, vector<8x128xf32> -> vector<8x128xf32>
    %11 = vector.broadcast %9 : vector<1x128xf32> to vector<8x128xf32>
    %12 = arith.addf %10, %11 : vector<8x128xf32>
    %cst_11 = arith.constant 0.000000e+00 : f32
    %13 = vector.broadcast %cst_11 : f32 to vector<8x128xf32>
    %14 = arith.maximumf %12, %13 : vector<8x128xf32>
    %c0_12 = arith.constant 0 : index
    %c0_13 = arith.constant 0 : index
    %15 = vector.load %arg6[%c0_12, %c0_13] : memref<128x128xf32, #tpu.memory_space<vmem>>, vector<128x128xf32>
    %c0_14 = arith.constant 0 : index
    %c0_15 = arith.constant 0 : index
    %16 = vector.load %arg7[%c0_14, %c0_15] : memref<1x128xf32, #tpu.memory_space<vmem>>, vector<1x128xf32>
    %cst_16 = arith.constant dense<0.000000e+00> : vector<8x128xf32>
    %17 = tpu.matmul %14, %15, %cst_16 {dimension_numbers = #tpu.dot_dimension_numbers<[1], [0], [0], [1], [0, 0, 1, 1], [], []>} : vector<8x128xf32>, vector<128x128xf32>, vector<8x128xf32> -> vector<8x128xf32>
    %18 = vector.broadcast %16 : vector<1x128xf32> to vector<8x128xf32>
    %19 = arith.addf %17, %18 : vector<8x128xf32>
    %c0_17 = arith.constant 0 : index
    %c0_18 = arith.constant 0 : index
    %20 = vector.load %arg8[%c0_17, %c0_18] : memref<8x128xf32, #tpu.memory_space<vmem>>, vector<8x128xf32>
    tpu.vector_store %arg8[%c0_17, %c0_18], %19 {strides = array<i32>} : memref<8x128xf32, #tpu.memory_space<vmem>>, vector<8x128xf32>,
    return
  }
  func.func @transform_0(%arg0: i32) -> (i32, i32) {
    %c0_i32 = arith.constant 0 : i32
    %c0_i32_0 = arith.constant 0 : i32
    return %arg0, %c0_i32 : i32, i32
  }
  func.func @transform_1(%arg0: i32) -> (i32, i32) {
    %c0_i32 = arith.constant 0 : i32
    %c0_i32_0 = arith.constant 0 : i32
    %c0_i32_1 = arith.constant 0 : i32
    return %c0_i32, %c0_i32_0 : i32, i32
  }
  func.func @transform_2(%arg0: i32) -> (i32, i32) {
    %c0_i32 = arith.constant 0 : i32
    %c0_i32_0 = arith.constant 0 : i32
    %c0_i32_1 = arith.constant 0 : i32
    return %c0_i32, %c0_i32_0 : i32, i32
  }
  func.func @transform_3(%arg0: i32) -> (i32, i32) {
    %c0_i32 = arith.constant 0 : i32
    %c0_i32_0 = arith.constant 0 : i32
    %c0_i32_1 = arith.constant 0 : i32
    return %c0_i32, %c0_i32_0 : i32, i32
  }
  func.func @transform_4(%arg0: i32) -> (i32, i32) {
    %c0_i32 = arith.constant 0 : i32
    %c0_i32_0 = arith.constant 0 : i32
    %c0_i32_1 = arith.constant 0 : i32
    return %c0_i32, %c0_i32_0 : i32, i32
  }
  func.func @transform_5(%arg0: i32) -> (i32, i32) {
    %c0_i32 = arith.constant 0 : i32
    %c0_i32_0 = arith.constant 0 : i32
    %c0_i32_1 = arith.constant 0 : i32
    return %c0_i32, %c0_i32_0 : i32, i32
  }
  func.func @transform_6(%arg0: i32) -> (i32, i32) {
    %c0_i32 = arith.constant 0 : i32
    %c0_i32_0 = arith.constant 0 : i32
    %c0_i32_1 = arith.constant 0 : i32
    return %c0_i32, %c0_i32_0 : i32, i32
  }
  func.func @transform_7(%arg0: i32) -> (i32, i32) {
    %c0_i32 = arith.constant 0 : i32
    %c0_i32_0 = arith.constant 0 : i32
    return %arg0, %c0_i32 : i32, i32
  }
}

</mosaic_0001>

<bundles_post_ra>
// kernel: tpu_custom_call.1
= control target key start
LH: loop header
LB: loop body
LE: loop exit
PB: predicated region body
PF: predicated region fallthrough
CT: control target
= control target key end

     0   :  { %12 = vsyncpa [#allocation3], 0  ;;  %s646_s0 = inlined_call_operand.vmem [shape: f32[8,4], index: 0, kind: input, shape index: {}]   ;;  %s647_s1 = inlined_call_operand.vmem [shape: f32[4,128], index: 1, kind: input, shape index: {}]   ;;  %s648_s2 = inlined_call_operand.vmem [shape: f32[1,128], index: 2, kind: input, shape index: {}]   ;;  %s649_s3 = inlined_call_operand.hbm [shape: f32[128,128], index: 3, kind: input, shape index: {}]   ;;  %s650_s4 = inlined_call_operand.vmem [shape: f32[1,128], index: 4, kind: input, shape index: {}]   ;;  %s651_s5 = inlined_call_operand.hbm [shape: f32[128,128], index: 5, kind: input, shape index: {}]   ;;  %s652_s6 = inlined_call_operand.vmem [shape: f32[1,128], index: 6, kind: input, shape index: {}]   ;;  %s653_s7 = inlined_call_operand.hbm [shape: f32[8,128], index: 7, kind: output, shape index: {}]  }
   0x1   :  { %13 = vsyncpa [#allocation6], 0 }
   0x2   :  { %14 = vsyncpa [#allocation4], 0  ;;  %s536_s24 = smov [#allocation2]  }
   0x3   :  { %s26_s25 = sshll.u32 %s536_s24, 4  ;;  %s27_s25 = int_to_ptr.vmem [resolvable:$true] %s26_s25 }
   0x4   :  { %s478_s26 = scalar_lea.vmem %s27_s25, 2048  ;;  %p483_p1 = scmp.lt.s32.totalorder %s27_s25, %s27_s25 }
   0x5   :  { %p479_p0 = scmp.ne.s32.totalorder %s27_s25, %s478_s26  ;;  %p484_p2 = scmp.lt.s32.totalorder %s478_s26, %s478_s26 }
   0x7   :  { %p485_p3 = por %p484_p2, %p483_p1 }
   0x9   :  { %p486_p4 = pnand %p485_p3, %p479_p0 }
   0xb   :  { %489 = shalt.err (!%p486_p4)
}
   0xc   :  { %s537_s27 = smov 128   ;;  %s538_s28 = smov 8  }
   0xd   :  { %32 = dma.hbm_to_vmem [thread:$0]  %s649_s3, 2048, %s27_s25, [#allocation3], %s537_s27, %s537_s27, %s538_s28  }
   0xe   :  { %s539_s8 = smov [#allocation5]  }
   0xf   :  { %s40_s9 = sshll.u32 %s539_s8, 4  ;;  %s41_s9 = int_to_ptr.vmem [resolvable:$true] %s40_s9 }
  0x10   :  { %s498_s10 = scalar_lea.vmem %s41_s9, 2048  ;;  %p503_p6 = scmp.lt.s32.totalorder %s41_s9, %s41_s9 }
  0x11   :  { %p499_p5 = scmp.ne.s32.totalorder %s41_s9, %s498_s10  ;;  %p504_p7 = scmp.lt.s32.totalorder %s498_s10, %s498_s10 }
  0x13   :  { %p505_p8 = por %p504_p7, %p503_p6 }
  0x15   :  { %p506_p9 = pnand %p505_p8, %p499_p5 }
  0x17   :  { %509 = shalt.err (!%p506_p9)
}
  0x18   :  { %46 = dma.hbm_to_vmem [thread:$0]  %s651_s5, 2048, %s41_s9, [#allocation6], %s537_s27, %s537_s27, %s538_s28  }
  0x19   :  { %530 = dma.done.wait [#allocation3], 2048  }
  0x1a   :  { %531 = vsyncadd [#allocation3], 4294965248 }
  0x1b   :  { %532 = dma.done.wait [#allocation6], 2048  }
  0x1c   :  { %533 = vsyncadd [#allocation6], 4294965248  ;;  %v540_v0 = vmov 0.0   ;;  %vm541_vm0 = vmmov 0   ;;  %vm68_vm1 = vcmask 1043456   ;;  %vm64_vm2 = vcmask 31744  }
  0x1d   :  { %388 = vmatprep.subr.mxu0 %v540_v0  ;;  %390 = vmatprep.mubr.msk.f32.mxu0 %vm541_vm0, %v540_v0  ;;  %v56_v1 = vld [vmem:[%s647_s1] sm:$0xf]  ;;  %v158_v3 = vld [vmem:[#allocation2 + $0x78] sm:$0xff]  ;;  %v157_v4 = vld [vmem:[#allocation2 + $0x70] sm:$0xff]  ;;  %s542_s18 = smov [#allocation7]  }
  0x1e   :  { %393 = vmatprep.subr.mxu1 %v540_v0  ;;  %425 = vmatprep.mubr.msk.f32.mxu1 %vm541_vm0, %v540_v0  ;;  %v55_v2 = vld [vmem:[%s646_s0] sm:$0xff]  ;;  %v156_v5 = vld [vmem:[#allocation2 + $0x68] sm:$0xff]  ;;  %v154_v7 = vld [vmem:[#allocation2 + $0x58] sm:$0xff]  ;;  %s337_s19 = sshll.u32 %s542_s18, 4  ;;  %s338_s19 = int_to_ptr.vmem [resolvable:$true] %s337_s19 }
  0x1f   :  { %389 = vmatpush3.msk.msra.mxu0 %vm68_vm1, %v56_v1  ;;  %394 = vmatpush3.msra.mxu1 %v158_v3  ;;  %v155_v6 = vld [vmem:[#allocation2 + $0x60] sm:$0xff]  ;;  %v153_v8 = vld [vmem:[#allocation2 + $0x50] sm:$0xff]  ;;  %v152_v9 = vld [vmem:[#allocation2 + $0x48] sm:$0xff]  ;;  %s510_s20 = scalar_lea.vmem %s338_s19, 128  ;;  %p515_p11 = scmp.lt.s32.totalorder %s338_s19, %s338_s19 }
  0x20   :  { %391 = vmatmul.mubr.msk.f32.vlgmr.msra.gmra.mxu0 %vm64_vm2, %v55_v2  ;;  %395 = vmatprep.subr.mxu1 %v540_v0  ;;  %v151_v10 = vld [vmem:[#allocation2 + $0x40] sm:$0xff]  ;;  %v150_v11 = vld [vmem:[#allocation2 + $0x38] sm:$0xff]  ;;  %v149_v12 = vld [vmem:[#allocation2 + $0x30] sm:$0xff]  ;;  %p511_p10 = scmp.ne.s32.totalorder %s338_s19, %s510_s20  ;;  %p516_p12 = scmp.lt.s32.totalorder %s510_s20, %s510_s20 }
  0x21   :  { %396 = vmatpush3.msra.mxu1 %v157_v4  ;;  %428 = vmatprep.subr.mxu0 %v540_v0  ;;  %v148_v13 = vld [vmem:[#allocation2 + $0x28] sm:$0xff]  ;;  %v147_v14 = vld [vmem:[#allocation2 + $0x20] sm:$0xff]  ;;  %v146_v15 = vld [vmem:[#allocation2 + $0x18] sm:$0xff] }
  0x22   :  { %397 = vmatprep.subr.mxu1 %v540_v0  ;;  %460 = vmatprep.mubr.msk.f32.mxu0 %vm541_vm0, %v540_v0  ;;  %v145_v16 = vld [vmem:[#allocation2 + $0x10] sm:$0xff]  ;;  %v144_v17 = vld [vmem:[#allocation2 + $0x8] sm:$0xff]  ;;  %v143_v18 = vld [vmem:[#allocation2] sm:$0xff]  ;;  %p517_p13 = por %p516_p12, %p515_p11 }
  0x23   :  { %398 = vmatpush3.msra.mxu1 %v156_v5  ;;  %v252_v19 = vld [vmem:[#allocation5 + $0x78] sm:$0xff]  ;;  %v251_v20 = vld [vmem:[#allocation5 + $0x70] sm:$0xff]  ;;  %v250_v21 = vld [vmem:[#allocation5 + $0x68] sm:$0xff] }
  0x24   :  { %399 = vmatprep.subr.mxu1 %v540_v0  ;;  %429 = vmatpush3.msra.mxu0 %v252_v19  ;;  %v249_v22 = vld [vmem:[#allocation5 + $0x60] sm:$0xff]  ;;  %v248_v23 = vld [vmem:[#allocation5 + $0x58] sm:$0xff]  ;;  %v247_v24 = vld [vmem:[#allocation5 + $0x50] sm:$0xff]  ;;  %p518_p0 = pnand %p517_p13, %p511_p10 }
  0x25   :  { %400 = vmatpush3.msra.mxu1 %v155_v6  ;;  %430 = vmatprep.subr.mxu0 %v540_v0  ;;  %v246_v25 = vld [vmem:[#allocation5 + $0x48] sm:$0xff]  ;;  %v245_v26 = vld [vmem:[#allocation5 + $0x40] sm:$0xff]  ;;  %v244_v27 = vld [vmem:[#allocation5 + $0x38] sm:$0xff] }
  0x26   :  { %401 = vmatprep.subr.mxu1 %v540_v0  ;;  %431 = vmatpush3.msra.mxu0 %v251_v20  ;;  %v243_v28 = vld [vmem:[#allocation5 + $0x30] sm:$0xff]  ;;  %v242_v29 = vld [vmem:[#allocation5 + $0x28] sm:$0xff]  ;;  %v241_v30 = vld [vmem:[#allocation5 + $0x20] sm:$0xff] }
  0x27   :  { %402 = vmatpush3.msra.mxu1 %v154_v7  ;;  %432 = vmatprep.subr.mxu0 %v540_v0  ;;  %v240_v31 = vld [vmem:[#allocation5 + $0x18] sm:$0xff]  ;;  %v347_v32 = vld [vmem:[%s648_s2] ss:$0 sm:$0xff]  ;;  %v239_v37 = vld [vmem:[#allocation5 + $0x10] sm:$0xff] }
  0x28   :  { %403 = vmatprep.subr.mxu1 %v540_v0  ;;  %433 = vmatpush3.msra.mxu0 %v250_v21  ;;  %v238_v38 = vld [vmem:[#allocation5 + $0x8] sm:$0xff]  ;;  %v237_v39 = vld [vmem:[#allocation5] sm:$0xff] }
  0x29   :  { %404 = vmatpush3.msra.mxu1 %v153_v8  ;;  %434 = vmatprep.subr.mxu0 %v540_v0  ;;  %v350_v40 = vld [vmem:[%s650_s4] ss:$0 sm:$0xff] }
  0x2a   :  { %405 = vmatprep.subr.mxu1 %v540_v0  ;;  %435 = vmatpush3.msra.mxu0 %v249_v22  ;;  %v351_v45 = vld [vmem:[%s652_s6] ss:$0 sm:$0xff] }
  0x2b   :  { %406 = vmatpush3.msra.mxu1 %v152_v9  ;;  %436 = vmatprep.subr.mxu0 %v540_v0 }
  0x2c   :  { %407 = vmatprep.subr.mxu1 %v540_v0  ;;  %437 = vmatpush3.msra.mxu0 %v248_v23 }
  0x2d   :  { %408 = vmatpush3.msra.mxu1 %v151_v10  ;;  %438 = vmatprep.subr.mxu0 %v540_v0 }
  0x2e   :  { %409 = vmatprep.subr.mxu1 %v540_v0  ;;  %439 = vmatpush3.msra.mxu0 %v247_v24 }
  0x2f   :  { %410 = vmatpush3.msra.mxu1 %v150_v11  ;;  %440 = vmatprep.subr.mxu0 %v540_v0 }
  0x30   :  { %411 = vmatprep.subr.mxu1 %v540_v0  ;;  %441 = vmatpush3.msra.mxu0 %v246_v25 }
  0x31   :  { %412 = vmatpush3.msra.mxu1 %v149_v12  ;;  %442 = vmatprep.subr.mxu0 %v540_v0 }
  0x32   :  { %413 = vmatprep.subr.mxu1 %v540_v0  ;;  %443 = vmatpush3.msra.mxu0 %v245_v26 }
  0x33   :  { %414 = vmatpush3.msra.mxu1 %v148_v13  ;;  %444 = vmatprep.subr.mxu0 %v540_v0 }
  0x34   :  { %415 = vmatprep.subr.mxu1 %v540_v0  ;;  %445 = vmatpush3.msra.mxu0 %v244_v27 }
  0x35   :  { %416 = vmatpush3.msra.mxu1 %v147_v14  ;;  %446 = vmatprep.subr.mxu0 %v540_v0 }
  0x36   :  { %417 = vmatprep.subr.mxu1 %v540_v0  ;;  %447 = vmatpush3.msra.mxu0 %v243_v28 }
  0x37   :  { %418 = vmatpush3.msra.mxu1 %v146_v15  ;;  %448 = vmatprep.subr.mxu0 %v540_v0 }
  0x38   :  { %419 = vmatprep.subr.mxu1 %v540_v0  ;;  %449 = vmatpush3.msra.mxu0 %v242_v29 }
  0x39   :  { %420 = vmatpush3.msra.mxu1 %v145_v16  ;;  %450 = vmatprep.subr.mxu0 %v540_v0 }
  0x3a   :  { %421 = vmatprep.subr.mxu1 %v540_v0  ;;  %451 = vmatpush3.msra.mxu0 %v241_v30 }
  0x3b   :  { %422 = vmatpush3.msra.mxu1 %v144_v17  ;;  %452 = vmatprep.subr.mxu0 %v540_v0 }
  0x3c   :  { %423 = vmatprep.subr.mxu1 %v540_v0  ;;  %453 = vmatpush3.msra.mxu0 %v240_v31 }
  0x3d   :  { %424 = vmatpush3.msra.mxu1 %v143_v18  ;;  %454 = vmatprep.subr.mxu0 %v540_v0 }
  0x3e   :  { %455 = vmatpush3.msra.mxu0 %v239_v37 }
  0x3f   :  { %456 = vmatprep.subr.mxu0 %v540_v0 }
  0x40   :  { %457 = vmatpush3.msra.mxu0 %v238_v38 }
  0x41   :  { %458 = vmatprep.subr.mxu0 %v540_v0 }
  0x42   :  { %459 = vmatpush3.msra.mxu0 %v237_v39 }
  0xe0   :  { %v138_v33 = vpop.f32.mrf.mxu0 }
  0xe1   :  { %v139_v34 = vadd.f32 %v347_v32, %v138_v33 }
  0xe2   :  { %v392_v35 = vpop.f32.mrf.mxu0 }
  0xe3   :  { %v142_v36 = vmax.f32 %v139_v34, 0.0 }
  0xe5   :  { %426 = vmatmul.mubr.f32.vlgmr.msra.gmra.mxu1 %v142_v36 }
 0x1a5   :  { %v232_v41 = vpop.f32.mrf.mxu1 }
 0x1a6   :  { %v233_v42 = vadd.f32 %v350_v40, %v232_v41 }
 0x1a7   :  { %v427_v43 = vpop.f32.mrf.mxu1 }
 0x1a8   :  { %v236_v44 = vmax.f32 %v233_v42, 0.0 }
 0x1aa   :  { %461 = vmatmul.mubr.f32.vlgmr.msra.gmra.mxu0 %v236_v44 }
 0x26a   :  { %v326_v46 = vpop.f32.mrf.mxu0 }
 0x26b   :  { %v327_v47 = vadd.f32 %v351_v45, %v326_v46 }
 0x26c   :  { %v462_v48 = vpop.f32.mrf.mxu0 }
 0x26d   :  { %330 = vst [vmem:[#allocation7] sm:$0xff] %v327_v47 }
 0x26e   :  { %521 = shalt.err (!%p518_p0)
}
 0x26f   :  { %340 = dma.vmem_to_hbm [thread:$0]  %s338_s19, 128, %s653_s7, [#allocation4]  }
 0x270   :  { %534 = dma.done.wait [#allocation4], 128  }
 0x271   :  { %535 = vsyncadd [#allocation4], 4294967168 }
 0x272   :  { %344 = vsyncpa [#allocation3], 1 }
 0x273   :  { %345 = vsyncpa [#allocation6], 1 }
 0x274   :  { %346 = vsyncpa [#allocation4], 1 }

// kernel: tpu_custom_call.1
= control target key start
LH: loop header
LB: loop body
LE: loop exit
PB: predicated region body
PF: predicated region fallthrough
CT: control target
= control target key end

     0   :  { %12 = vsyncpa [#allocation3], 0  ;;  %s646_s0 = inlined_call_operand.vmem [shape: f32[8,4], index: 0, kind: input, shape index: {}]   ;;  %s647_s1 = inlined_call_operand.vmem [shape: f32[4,128], index: 1, kind: input, shape index: {}]   ;;  %s648_s2 = inlined_call_operand.vmem [shape: f32[1,128], index: 2, kind: input, shape index: {}]   ;;  %s649_s3 = inlined_call_operand.hbm [shape: f32[128,128], index: 3, kind: input, shape index: {}]   ;;  %s650_s4 = inlined_call_operand.vmem [shape: f32[1,128], index: 4, kind: input, shape index: {}]   ;;  %s651_s5 = inlined_call_operand.hbm [shape: f32[128,128], index: 5, kind: input, shape index: {}]   ;;  %s652_s6 = inlined_call_operand.vmem [shape: f32[1,128], index: 6, kind: input, shape index: {}]   ;;  %s653_s7 = inlined_call_operand.hbm [shape: f32[8,128], index: 7, kind: output, shape index: {}]  }
   0x1   :  { %13 = vsyncpa [#allocation6], 0 }
   0x2   :  { %14 = vsyncpa [#allocation4], 0  ;;  %s536_s24 = smov [#allocation2]  }
   0x3   :  { %s26_s25 = sshll.u32 %s536_s24, 4  ;;  %s27_s25 = int_to_ptr.vmem [resolvable:$true] %s26_s25 }
   0x4   :  { %s478_s26 = scalar_lea.vmem %s27_s25, 2048  ;;  %p483_p1 = scmp.lt.s32.totalorder %s27_s25, %s27_s25 }
   0x5   :  { %p479_p0 = scmp.ne.s32.totalorder %s27_s25, %s478_s26  ;;  %p484_p2 = scmp.lt.s32.totalorder %s478_s26, %s478_s26 }
   0x7   :  { %p485_p3 = por %p484_p2, %p483_p1 }
   0x9   :  { %p486_p4 = pnand %p485_p3, %p479_p0 }
   0xb   :  { %489 = shalt.err (!%p486_p4)
}
   0xc   :  { %s537_s27 = smov 128   ;;  %s538_s28 = smov 8  }
   0xd   :  { %32 = dma.hbm_to_vmem [thread:$0]  %s649_s3, 2048, %s27_s25, [#allocation3], %s537_s27, %s537_s27, %s538_s28  }
   0xe   :  { %s539_s8 = smov [#allocation5]  }
   0xf   :  { %s40_s9 = sshll.u32 %s539_s8, 4  ;;  %s41_s9 = int_to_ptr.vmem [resolvable:$true] %s40_s9 }
  0x10   :  { %s498_s10 = scalar_lea.vmem %s41_s9, 2048  ;;  %p503_p6 = scmp.lt.s32.totalorder %s41_s9, %s41_s9 }
  0x11   :  { %p499_p5 = scmp.ne.s32.totalorder %s41_s9, %s498_s10  ;;  %p504_p7 = scmp.lt.s32.totalorder %s498_s10, %s498_s10 }
  0x13   :  { %p505_p8 = por %p504_p7, %p503_p6 }
  0x15   :  { %p506_p9 = pnand %p505_p8, %p499_p5 }
  0x17   :  { %509 = shalt.err (!%p506_p9)
}
  0x18   :  { %46 = dma.hbm_to_vmem [thread:$0]  %s651_s5, 2048, %s41_s9, [#allocation6], %s537_s27, %s537_s27, %s538_s28  }
  0x19   :  { %530 = dma.done.wait [#allocation3], 2048  }
  0x1a   :  { %531 = vsyncadd [#allocation3], 4294965248 }
  0x1b   :  { %532 = dma.done.wait [#allocation6], 2048  }
  0x1c   :  { %533 = vsyncadd [#allocation6], 4294965248  ;;  %v540_v0 = vmov 0.0   ;;  %vm541_vm0 = vmmov 0   ;;  %vm68_vm1 = vcmask 1043456   ;;  %vm64_vm2 = vcmask 31744  }
  0x1d   :  { %388 = vmatprep.subr.mxu0 %v540_v0  ;;  %390 = vmatprep.mubr.msk.f32.mxu0 %vm541_vm0, %v540_v0  ;;  %v56_v1 = vld [vmem:[%s647_s1] sm:$0xf]  ;;  %v158_v3 = vld [vmem:[#allocation2 + $0x78] sm:$0xff]  ;;  %v157_v4 = vld [vmem:[#allocation2 + $0x70] sm:$0xff]  ;;  %s542_s18 = smov [#allocation7]  }
  0x1e   :  { %393 = vmatprep.subr.mxu1 %v540_v0  ;;  %425 = vmatprep.mubr.msk.f32.mxu1 %vm541_vm0, %v540_v0  ;;  %v55_v2 = vld [vmem:[%s646_s0] sm:$0xff]  ;;  %v156_v5 = vld [vmem:[#allocation2 + $0x68] sm:$0xff]  ;;  %v154_v7 = vld [vmem:[#allocation2 + $0x58] sm:$0xff]  ;;  %s337_s19 = sshll.u32 %s542_s18, 4  ;;  %s338_s19 = int_to_ptr.vmem [resolvable:$true] %s337_s19 }
  0x1f   :  { %389 = vmatpush3.msk.msra.mxu0 %vm68_vm1, %v56_v1  ;;  %394 = vmatpush3.msra.mxu1 %v158_v3  ;;  %v155_v6 = vld [vmem:[#allocation2 + $0x60] sm:$0xff]  ;;  %v153_v8 = vld [vmem:[#allocation2 + $0x50] sm:$0xff]  ;;  %v152_v9 = vld [vmem:[#allocation2 + $0x48] sm:$0xff]  ;;  %s510_s20 = scalar_lea.vmem %s338_s19, 128  ;;  %p515_p11 = scmp.lt.s32.totalorder %s338_s19, %s338_s19 }
  0x20   :  { %391 = vmatmul.mubr.msk.f32.vlgmr.msra.gmra.mxu0 %vm64_vm2, %v55_v2  ;;  %395 = vmatprep.subr.mxu1 %v540_v0  ;;  %v151_v10 = vld [vmem:[#allocation2 + $0x40] sm:$0xff]  ;;  %v150_v11 = vld [vmem:[#allocation2 + $0x38] sm:$0xff]  ;;  %v149_v12 = vld [vmem:[#allocation2 + $0x30] sm:$0xff]  ;;  %p511_p10 = scmp.ne.s32.totalorder %s338_s19, %s510_s20  ;;  %p516_p12 = scmp.lt.s32.totalorder %s510_s20, %s510_s20 }
  0x21   :  { %396 = vmatpush3.msra.mxu1 %v157_v4  ;;  %428 = vmatprep.subr.mxu0 %v540_v0  ;;  %v148_v13 = vld [vmem:[#allocation2 + $0x28] sm:$0xff]  ;;  %v147_v14 = vld [vmem:[#allocation2 + $0x20] sm:$0xff]  ;;  %v146_v15 = vld [vmem:[#allocation2 + $0x18] sm:$0xff] }
  0x22   :  { %397 = vmatprep.subr.mxu1 %v540_v0  ;;  %460 = vmatprep.mubr.msk.f32.mxu0 %vm541_vm0, %v540_v0  ;;  %v145_v16 = vld [vmem:[#allocation2 + $0x10] sm:$0xff]  ;;  %v144_v17 = vld [vmem:[#allocation2 + $0x8] sm:$0xff]  ;;  %v143_v18 = vld [vmem:[#allocation2] sm:$0xff]  ;;  %p517_p13 = por %p516_p12, %p515_p11 }
  0x23   :  { %398 = vmatpush3.msra.mxu1 %v156_v5  ;;  %v252_v19 = vld [vmem:[#allocation5 + $0x78] sm:$0xff]  ;;  %v251_v20 = vld [vmem:[#allocation5 + $0x70] sm:$0xff]  ;;  %v250_v21 = vld [vmem:[#allocation5 + $0x68] sm:$0xff] }
  0x24   :  { %399 = vmatprep.subr.mxu1 %v540_v0  ;;  %429 = vmatpush3.msra.mxu0 %v252_v19  ;;  %v249_v22 = vld [vmem:[#allocation5 + $0x60] sm:$0xff]  ;;  %v248_v23 = vld [vmem:[#allocation5 + $0x58] sm:$0xff]  ;;  %v247_v24 = vld [vmem:[#allocation5 + $0x50] sm:$0xff]  ;;  %p518_p0 = pnand %p517_p13, %p511_p10 }
  0x25   :  { %400 = vmatpush3.msra.mxu1 %v155_v6  ;;  %430 = vmatprep.subr.mxu0 %v540_v0  ;;  %v246_v25 = vld [vmem:[#allocation5 + $0x48] sm:$0xff]  ;;  %v245_v26 = vld [vmem:[#allocation5 + $0x40] sm:$0xff]  ;;  %v244_v27 = vld [vmem:[#allocation5 + $0x38] sm:$0xff] }
  0x26   :  { %401 = vmatprep.subr.mxu1 %v540_v0  ;;  %431 = vmatpush3.msra.mxu0 %v251_v20  ;;  %v243_v28 = vld [vmem:[#allocation5 + $0x30] sm:$0xff]  ;;  %v242_v29 = vld [vmem:[#allocation5 + $0x28] sm:$0xff]  ;;  %v241_v30 = vld [vmem:[#allocation5 + $0x20] sm:$0xff] }
  0x27   :  { %402 = vmatpush3.msra.mxu1 %v154_v7  ;;  %432 = vmatprep.subr.mxu0 %v540_v0  ;;  %v240_v31 = vld [vmem:[#allocation5 + $0x18] sm:$0xff]  ;;  %v347_v32 = vld [vmem:[%s648_s2] ss:$0 sm:$0xff]  ;;  %v239_v37 = vld [vmem:[#allocation5 + $0x10] sm:$0xff] }
  0x28   :  { %403 = vmatprep.subr.mxu1 %v540_v0  ;;  %433 = vmatpush3.msra.mxu0 %v250_v21  ;;  %v238_v38 = vld [vmem:[#allocation5 + $0x8] sm:$0xff]  ;;  %v237_v39 = vld [vmem:[#allocation5] sm:$0xff] }
  0x29   :  { %404 = vmatpush3.msra.mxu1 %v153_v8  ;;  %434 = vmatprep.subr.mxu0 %v540_v0  ;;  %v350_v40 = vld [vmem:[%s650_s4] ss:$0 sm:$0xff] }
  0x2a   :  { %405 = vmatprep.subr.mxu1 %v540_v0  ;;  %435 = vmatpush3.msra.mxu0 %v249_v22  ;;  %v351_v45 = vld [vmem:[%s652_s6] ss:$0 sm:$0xff] }
  0x2b   :  { %406 = vmatpush3.msra.mxu1 %v152_v9  ;;  %436 = vmatprep.subr.mxu0 %v540_v0 }
  0x2c   :  { %407 = vmatprep.subr.mxu1 %v540_v0  ;;  %437 = vmatpush3.msra.mxu0 %v248_v23 }
  0x2d   :  { %408 = vmatpush3.msra.mxu1 %v151_v10  ;;  %438 = vmatprep.subr.mxu0 %v540_v0 }
  0x2e   :  { %409 = vmatprep.subr.mxu1 %v540_v0  ;;  %439 = vmatpush3.msra.mxu0 %v247_v24 }
  0x2f   :  { %410 = vmatpush3.msra.mxu1 %v150_v11  ;;  %440 = vmatprep.subr.mxu0 %v540_v0 }
  0x30   :  { %411 = vmatprep.subr.mxu1 %v540_v0  ;;  %441 = vmatpush3.msra.mxu0 %v246_v25 }
  0x31   :  { %412 = vmatpush3.msra.mxu1 %v149_v12  ;;  %442 = vmatprep.subr.mxu0 %v540_v0 }
  0x32   :  { %413 = vmatprep.subr.mxu1 %v540_v0  ;;  %443 = vmatpush3.msra.mxu0 %v245_v26 }
  0x33   :  { %414 = vmatpush3.msra.mxu1 %v148_v13  ;;  %444 = vmatprep.subr.mxu0 %v540_v0 }
  0x34   :  { %415 = vmatprep.subr.mxu1 %v540_v0  ;;  %445 = vmatpush3.msra.mxu0 %v244_v27 }
  0x35   :  { %416 = vmatpush3.msra.mxu1 %v147_v14  ;;  %446 = vmatprep.subr.mxu0 %v540_v0 }
  0x36   :  { %417 = vmatprep.subr.mxu1 %v540_v0  ;;  %447 = vmatpush3.msra.mxu0 %v243_v28 }
  0x37   :  { %418 = vmatpush3.msra.mxu1 %v146_v15  ;;  %448 = vmatprep.subr.mxu0 %v540_v0 }
  0x38   :  { %419 = vmatprep.subr.mxu1 %v540_v0  ;;  %449 = vmatpush3.msra.mxu0 %v242_v29 }
  0x39   :  { %420 = vmatpush3.msra.mxu1 %v145_v16  ;;  %450 = vmatprep.subr.mxu0 %v540_v0 }
  0x3a   :  { %421 = vmatprep.subr.mxu1 %v540_v0  ;;  %451 = vmatpush3.msra.mxu0 %v241_v30 }
  0x3b   :  { %422 = vmatpush3.msra.mxu1 %v144_v17  ;;  %452 = vmatprep.subr.mxu0 %v540_v0 }
  0x3c   :  { %423 = vmatprep.subr.mxu1 %v540_v0  ;;  %453 = vmatpush3.msra.mxu0 %v240_v31 }
  0x3d   :  { %424 = vmatpush3.msra.mxu1 %v143_v18  ;;  %454 = vmatprep.subr.mxu0 %v540_v0 }
  0x3e   :  { %455 = vmatpush3.msra.mxu0 %v239_v37 }
  0x3f   :  { %456 = vmatprep.subr.mxu0 %v540_v0 }
  0x40   :  { %457 = vmatpush3.msra.mxu0 %v238_v38 }
  0x41   :  { %458 = vmatprep.subr.mxu0 %v540_v0 }
  0x42   :  { %459 = vmatpush3.msra.mxu0 %v237_v39 }
  0xe0   :  { %v138_v33 = vpop.f32.mrf.mxu0 }
  0xe1   :  { %v139_v34 = vadd.f32 %v347_v32, %v138_v33 }
  0xe2   :  { %v392_v35 = vpop.f32.mrf.mxu0 }
  0xe3   :  { %v142_v36 = vmax.f32 %v139_v34, 0.0 }
  0xe5   :  { %426 = vmatmul.mubr.f32.vlgmr.msra.gmra.mxu1 %v142_v36 }
 0x1a5   :  { %v232_v41 = vpop.f32.mrf.mxu1 }
 0x1a6   :  { %v233_v42 = vadd.f32 %v350_v40, %v232_v41 }
 0x1a7   :  { %v427_v43 = vpop.f32.mrf.mxu1 }
 0x1a8   :  { %v236_v44 = vmax.f32 %v233_v42, 0.0 }
 0x1aa   :  { %461 = vmatmul.mubr.f32.vlgmr.msra.gmra.mxu0 %v236_v44 }
 0x26a   :  { %v326_v46 = vpop.f32.mrf.mxu0 }
 0x26b   :  { %v327_v47 = vadd.f32 %v351_v45, %v326_v46 }
 0x26c   :  { %v462_v48 = vpop.f32.mrf.mxu0 }
 0x26d   :  { %330 = vst [vmem:[#allocation7] sm:$0xff] %v327_v47 }
 0x26e   :  { %521 = shalt.err (!%p518_p0)
}
 0x26f   :  { %340 = dma.vmem_to_hbm [thread:$0]  %s338_s19, 128, %s653_s7, [#allocation4]  }
 0x270   :  { %534 = dma.done.wait [#allocation4], 128  }
 0x271   :  { %535 = vsyncadd [#allocation4], 4294967168 }
 0x272   :  { %344 = vsyncpa [#allocation3], 1 }
 0x273   :  { %345 = vsyncpa [#allocation6], 1 }
 0x274   :  { %346 = vsyncpa [#allocation4], 1 }

</bundles_post_ra>
